<compile_context>
chip_gen: v7x
topology: tpu7x:2x2x1
jax: 0.10.0
libtpu: 0.0.40
codegen_flags: <defaults>
</compile_context>

<pallas_src>
import jax
import jax.numpy as jnp
from jax import lax
from jax.experimental import pallas as pl
from jax.experimental.pallas import tpu as pltpu


def _upsample2x_rows_kernel(x_ref, d_ref, o_ref):
    # x_ref: (TR, W)   input rows (each row = x[b, c, i, :])
    # d_ref: (W, 2W)   constant 0/1 dilation matrix
    # o_ref: (TR, 4W)  contiguous (2, 2W) output chunk of every input row
    v = x_ref[...]                                       # (TR, W)
    # Lane dilation on the idle MXU: dup[:, m] = v[:, m // 2].
    # precision=HIGHEST keeps the f32 operand chunking exact (pure copy).
    dup = jnp.dot(v, d_ref[...],
                  preferred_element_type=jnp.float32,
                  precision=lax.Precision.HIGHEST)       # (TR, 2W) f32
    dup = dup.astype(o_ref.dtype)
    w2 = dup.shape[-1]
    # H-duplication: output rows 2i and 2i+1 are the two 2W halves of the 4W
    # chunk.  Both stores are full-row (lane-dense whenever 2W % 128 == 0).
    o_ref[:, :w2] = dup
    o_ref[:, w2:] = dup


def _choose_tiling(nrows, w, itemsize):
    """Returns (tile_rows, vmem_limit_bytes), sized from the chip's VMEM."""
    try:
        phys = int(pltpu.get_tpu_info().vmem_capacity_bytes)
    except Exception:
        phys = 64 << 20                       # v7x floor: safe on every chip

    per_row = ((2 * (w + 4 * w)   # double-buffered input (W) / output (4W) blocks
                + 3 * w)          # loaded value + cast copy of the product
               * itemsize
               + 2 * w * 4)       # f32 MXU product (TR, 2W)
    budget = min(phys // 4, 40 << 20)         # keep >= 3/4 of VMEM as headroom
    tr = max(1, budget // max(per_row, 1))
    if nrows >= 16:
        tr = min(tr, pl.cdiv(nrows, 2))       # >= 2 grid steps: both v7x TCs busy
    if tr < nrows:
        tr = max(8, (tr // 8) * 8)            # sublane block dim: multiple of 8
    tr = min(tr, nrows)

    vmem_limit = int(min(phys - (8 << 20), max(64 << 20, 3 * budget)))
    return tr, vmem_limit


def upsample_nearest_2x(x):
    """Nearest-neighbour 2x upsample, NCHW in / NCHW out.

    Matches F.interpolate(x, (2H, 2W), 'nearest') exactly for finite inputs.
    """
    b, c, h, w = x.shape
    if not jnp.issubdtype(x.dtype, jnp.floating):
        # MXU dilation path needs a float dtype; integer inputs are not a
        # model path — plain XLA fallback.
        return jnp.repeat(jnp.repeat(x, 2, axis=2), 2, axis=3)

    nrows = b * c * h
    x_rows = x.reshape(nrows, w)              # free row-major view, no transpose

    tr, vmem_limit = _choose_tiling(nrows, w, x.dtype.itemsize)
    grid = (pl.cdiv(nrows, tr),)              # ragged tail handled by masking

    # 0/1 selection matrix: (v @ d)[:, m] == v[:, m // 2]
    d = (jnp.arange(w)[:, None] == (jnp.arange(2 * w)[None, :] // 2)).astype(x.dtype)

    out_rows = pl.pallas_call(
        _upsample2x_rows_kernel,
        out_shape=jax.ShapeDtypeStruct((nrows, 4 * w), x.dtype),
        grid=grid,
        in_specs=[
            pl.BlockSpec((tr, w), lambda i: (i, 0)),
            pl.BlockSpec((w, 2 * w), lambda i: (0, 0)),   # constant block
        ],
        out_specs=pl.BlockSpec((tr, 4 * w), lambda i: (i, 0)),
        compiler_params=pltpu.CompilerParams(
            dimension_semantics=("parallel",),
            vmem_limit_bytes=vmem_limit,
        ),
    )(x_rows, d)

    # (B*C*H, 4W) is the same row-major buffer as (B, C, 2H, 2W): free view.
    return out_rows.reshape(b, c, 2 * h, 2 * w)


class Upsample:
    """Pallas port of layerspp.Upsample (forward pass only)."""

    def __init__(self, in_ch=None, out_ch=None, with_conv=False, fir=False,
                 fir_kernel=(1, 3, 3, 1)):
        self.out_ch = out_ch if out_ch else in_ch
        self.with_conv = with_conv
        self.fir = fir
        self.fir_kernel = fir_kernel
        # TODO(synk): with_conv=True (3x3 conv after upsample) and fir=True
        # (upfirdn2d FIR upsampling / up_or_down_sampling.Conv2d with up=True)
        # branches are not implemented as Pallas kernels here.

    def __call__(self, x):
        if self.fir or self.with_conv:
            raise NotImplementedError(
                "Only the default path (fir=False, with_conv=False) is "
                "implemented as a Pallas kernel.")
        return upsample_nearest_2x(x)


if __name__ == "__main__":
    key = jax.random.PRNGKey(0)
    B, C, H, W = 2, 4, 16, 16
    x = jax.random.normal(key, (B, C, H, W), dtype=jnp.float32)

    up = Upsample(in_ch=C)                    # default config: nearest 2x upsample
    out = jax.block_until_ready(up(x))

    # Reference: F.interpolate(x, (2H, 2W), 'nearest') == each pixel -> 2x2 block
    ref = jnp.repeat(jnp.repeat(x, 2, axis=2), 2, axis=3)
    assert out.shape == (B, C, 2 * H, 2 * W)
    assert bool(jnp.array_equal(out, ref)), "mismatch vs nearest-neighbour reference"
    print("KERNEL_OK")
</pallas_src>

<mosaic_0001>
module attributes {stable_mosaic.version = 11 : i64} {
  func.func @_upsample2x_rows_kernel(%arg0: i32, %arg1: memref<64x16xf32, #tpu.memory_space<vmem>>, %arg2: memref<16x32xf32, #tpu.memory_space<vmem>>, %arg3: memref<64x64xf32, #tpu.memory_space<vmem>>) attributes {dimension_semantics = [#tpu.dimension_semantics<parallel>], iteration_bounds = array<i64: 2>, scalar_prefetch = 0 : i64, scratch_operands = 0 : i64, tpu.core_type = #tpu.core_type<tc>, window_params = [{transform_indices = @transform_0, window_bounds = array<i64: 64, 16>}, {pipeline_mode = #tpu.pipeline_mode<synchronous>, transform_indices = @transform_1, window_bounds = array<i64: 16, 32>}, {transform_indices = @transform_2, window_bounds = array<i64: 64, 64>}]} {
    %c0 = arith.constant 0 : index
    %c0_0 = arith.constant 0 : index
    %0 = vector.load %arg1[%c0, %c0_0] : memref<64x16xf32, #tpu.memory_space<vmem>>, vector<64x16xf32>
    %c0_1 = arith.constant 0 : index
    %c0_2 = arith.constant 0 : index
    %1 = vector.load %arg2[%c0_1, %c0_2] : memref<16x32xf32, #tpu.memory_space<vmem>>, vector<16x32xf32>
    %cst = arith.constant dense<0.000000e+00> : vector<64x32xf32>
    %2 = tpu.matmul %0, %1, %cst {dimension_numbers = #tpu.dot_dimension_numbers<[1], [0], [0], [1], [0, 0, 1, 1], [], []>, precision = #tpu.contract_precision<fp32>} : vector<64x16xf32>, vector<16x32xf32>, vector<64x32xf32> -> vector<64x32xf32>
    %c0_3 = arith.constant 0 : index
    %c0_4 = arith.constant 0 : index
    %3 = vector.load %arg3[%c0_3, %c0_4] : memref<64x64xf32, #tpu.memory_space<vmem>>, vector<64x32xf32>
    tpu.vector_store %arg3[%c0_3, %c0_4], %2 {strides = array<i32>} : memref<64x64xf32, #tpu.memory_space<vmem>>, vector<64x32xf32>,
    %c0_5 = arith.constant 0 : index
    %c32 = arith.constant 32 : index
    %4 = vector.load %arg3[%c0_5, %c32] : memref<64x64xf32, #tpu.memory_space<vmem>>, vector<64x32xf32>
    tpu.vector_store %arg3[%c0_5, %c32], %2 {strides = array<i32>} : memref<64x64xf32, #tpu.memory_space<vmem>>, vector<64x32xf32>,
    return
  }
  func.func @transform_0(%arg0: i32) -> (i32, i32) {
    %c0_i32 = arith.constant 0 : i32
    %c0_i32_0 = arith.constant 0 : i32
    return %arg0, %c0_i32 : i32, i32
  }
  func.func @transform_1(%arg0: i32) -> (i32, i32) {
    %c0_i32 = arith.constant 0 : i32
    %c0_i32_0 = arith.constant 0 : i32
    %c0_i32_1 = arith.constant 0 : i32
    return %c0_i32, %c0_i32_0 : i32, i32
  }
  func.func @transform_2(%arg0: i32) -> (i32, i32) {
    %c0_i32 = arith.constant 0 : i32
    %c0_i32_0 = arith.constant 0 : i32
    return %arg0, %c0_i32 : i32, i32
  }
}

</mosaic_0001>

<bundles_post_ra>
// kernel: tpu_custom_call.1
= control target key start
LH: loop header
LB: loop body
LE: loop exit
PB: predicated region body
PF: predicated region fallthrough
CT: control target
= control target key end

     0   :  { %s1312_s9 = smov 0   ;;  %s1493_s0 = inlined_call_operand.vmem [shape: f32[128,16], index: 0, kind: input, shape index: {}]   ;;  %s1494_s1 = inlined_call_operand.vmem [shape: f32[16,32], index: 1, kind: input, shape index: {}]   ;;  %s1495_s2 = inlined_call_operand.vmem [shape: f32[128,64], index: 2, kind: output, shape index: {}]  }
   0x1 LB: > { %s1048_s10 = sadd.s32 4294967295, %s1294_s9   ;;  %p1052_p0 = scmp.ge.s32.totalorder %s1294_s9, 1  ;;  %s1294_s9 = sphi %s1312_s9, %s12_s9  }
   0x2   : > { %p113_p1 = scmp.lt.s32.totalorder %s1294_s9, 3 }
   0x4   : > { %p114_p2 = pnand %p1052_p0, %p113_p1 }
   0x5   : > { %v155_v0 = vld [vmem:[%s1494_s1] sm:$0xff] (!%p114_p2)  ;;  %v156_v1 = vld [vmem:[%s1494_s1 + $0x8] sm:$0xff] (!%p114_p2)  ;;  %s1053_s15 = sshll.u32 (!%p114_p2), %s1048_s10, 3  ;;  %vm157_vm0 = vcmask (!%p114_p2), 130048   ;;  %vm942_vm1 = vcmask (!%p114_p2), 261120   ;;  %s1296_s23 = smov (!%p114_p2), 32  }
   0x6   : > { %117 = sbr.rel (%p114_p2) target bundleno = 407 (0x197), region = 28  ;;  %v183_v2 = vand.u32 (!%p114_p2), 4294901760, %v155_v0  ;;  %v186_v3 = vand.u32 (!%p114_p2), 4294901760, %v156_v1  ;;  %p136_p3 = scmp.lt.s32.totalorder (!%p114_p2), %s1053_s15, 15  ;;  %vm983_vm2 = vcmask (!%p114_p2), 523520  }
   0x8   : > { %v1326_v4 = vpack.c.bf16 (!%p114_p2), %v186_v3, %v183_v2  ;;  %v1330_v5 = vsub.f32 (!%p114_p2), %v155_v0, %v183_v2  ;;  %v1332_v6 = vsub.f32 (!%p114_p2), %v156_v1, %v186_v3 }
   0xa   : > { %1228 = vmatprep.subr.bf16.mxu0 (!%p114_p2), %v1326_v4  ;;  %1216 = vmatprep.subr.bf16.mxu1 (!%p114_p2), %v1326_v4  ;;  %v332_v7 = vand.u32 (!%p114_p2), 4294901760, %v1330_v5  ;;  %v339_v8 = vand.u32 (!%p114_p2), 4294901760, %v1332_v6  ;;  %v1223_v62 = vpack.c.bf16 (!%p114_p2), %v1332_v6, %v1330_v5 }
   0xb   : > { %1230 = vmatpush3.bf16.msra.mxu0 (!%p114_p2), %v1326_v4  ;;  %1218 = vmatpush3.bf16.msra.mxu1 (!%p114_p2), %v1326_v4 }
   0xc   : > { %v333_v11 = vsub.f32 (!%p114_p2), %v1330_v5, %v332_v7  ;;  %v340_v12 = vsub.f32 (!%p114_p2), %v1332_v6, %v339_v8  ;;  %v1231_v14 = vpack.c.bf16 (!%p114_p2), %v339_v8, %v332_v7 }
   0xd   : > { %s1497_s15 = smov (!%p136_p3, %s1053_s15), 15 }
   0xe   : > { %s1054_s16 = sshll.u32 %s1497_s15, 3  ;;  %v334_v23 = vand.u32 4294901760, %v333_v11  ;;  %v341_v24 = vand.u32 4294901760, %v340_v12  ;;  %1232 = vmatprep.subr.bf16.mxu0 %v1231_v14 }
   0xf   : > { %s139_s19 = scalar_lea.vmem %s1493_s0, %s1054_s16  ;;  %s1448_s22 = scalar_lea.vmem %s1495_s2, %s1054_s16 }
  0x10   : > { %v147_v9 = vld [vmem:[%s139_s19] sm:$0xff]  ;;  %v148_v10 = vld [vmem:[%s139_s19 + $0x8] sm:$0xff]  ;;  %v149_v13 = vld [vmem:[%s139_s19 + $0x10] sm:$0xff]  ;;  %v1219_v32 = vpack.c.bf16 %v341_v24, %v334_v23 }
  0x11   : > { %v159_v15 = vsel %vm157_vm0, %v147_v9, 0  ;;  %v162_v16 = vsel %vm157_vm0, %v148_v10, 0  ;;  %v165_v17 = vsel %vm157_vm0, %v149_v13, 0  ;;  %v150_v18 = vld [vmem:[%s139_s19 + $0x18] sm:$0xff]  ;;  %v151_v19 = vld [vmem:[%s139_s19 + $0x20] sm:$0xff]  ;;  %v152_v20 = vld [vmem:[%s139_s19 + $0x28] sm:$0xff] }
  0x12   : > { %v1351_v21 = vand.u32 4294901760, %v159_v15  ;;  %v1353_v22 = vand.u32 4294901760, %v162_v16  ;;  %v153_v25 = vld [vmem:[%s139_s19 + $0x30] sm:$0xff]  ;;  %v1355_v26 = vand.u32 4294901760, %v165_v17  ;;  %v168_v27 = vsel %vm157_vm0, %v150_v18, 0  ;;  %v154_v34 = vld [vmem:[%s139_s19 + $0x38] sm:$0xff]  ;;  %1220 = vmatprep.subr.bf16.mxu1 %v1219_v32 }
  0x13   : > { %v171_v28 = vsel %vm157_vm0, %v151_v19, 0  ;;  %v174_v29 = vsel %vm157_vm0, %v152_v20, 0  ;;  %v1366_v33 = vand.u32 4294901760, %v168_v27  ;;  %v177_v38 = vsel %vm157_vm0, %v153_v25, 0 }
  0x14   : > { %v1361_v30 = vsub.f32 %v159_v15, %v1351_v21  ;;  %v1364_v31 = vsub.f32 %v162_v16, %v1353_v22  ;;  %v1369_v35 = vsub.f32 %v165_v17, %v1355_v26  ;;  %v1371_v36 = vand.u32 4294901760, %v171_v28 }
  0x15   : > { %v1373_v37 = vand.u32 4294901760, %v174_v29  ;;  %v1379_v41 = vsub.f32 %v168_v27, %v1366_v33  ;;  %v1381_v42 = vand.u32 4294901760, %v177_v38  ;;  %v180_v46 = vsel %vm157_vm0, %v154_v34, 0 }
  0x16   : > { %v251_v39 = vand.u32 4294901760, %v1361_v30  ;;  %v261_v40 = vand.u32 4294901760, %v1364_v31  ;;  %v271_v43 = vand.u32 4294901760, %v1369_v35  ;;  %v1385_v44 = vsub.f32 %v171_v28, %v1371_v36 }
  0x17   : > { %v1388_v45 = vsub.f32 %v174_v29, %v1373_v37  ;;  %v281_v49 = vand.u32 4294901760, %v1379_v41  ;;  %v1395_v50 = vsub.f32 %v177_v38, %v1381_v42  ;;  %v1400_v54 = vand.u32 4294901760, %v180_v46 }
  0x18   : > { %1171 = vmatprep.mubr.f32.mxu0 %v251_v39  ;;  %v252_v47 = vsub.f32 %v1361_v30, %v251_v39  ;;  %v262_v48 = vsub.f32 %v1364_v31, %v261_v40  ;;  %v272_v51 = vsub.f32 %v1369_v35, %v271_v43  ;;  %v291_v52 = vand.u32 4294901760, %v1385_v44 }
  0x19   : > { %1172 = vmatmul.mubr.f32.vlgmr.msra.gmra.mrb[0].mxu0 %v261_v40  ;;  %v301_v53 = vand.u32 4294901760, %v1388_v45  ;;  %v282_v57 = vsub.f32 %v1379_v41, %v281_v49  ;;  %v311_v58 = vand.u32 4294901760, %v1395_v50  ;;  %v320_v61 = vsub.f32 %v180_v46, %v1400_v54 }
  0x1a   : > { %v253_v55 = vand.u32 4294901760, %v252_v47  ;;  %1174 = vmatprep.mubr.f32.mxu0 %v271_v43  ;;  %v263_v56 = vand.u32 4294901760, %v262_v48  ;;  %1234 = vmatpush3.bf16.msra.mxu0 %v1231_v14  ;;  %v273_v59 = vand.u32 4294901760, %v272_v51  ;;  %v292_v60 = vsub.f32 %v1385_v44, %v291_v52 }
  0x1b   : > { %1236 = vmatprep.subr.bf16.mxu0 %v1326_v4  ;;  %v283_v63 = vand.u32 4294901760, %v282_v57  ;;  %v302_v0 = vsub.f32 %v1388_v45, %v301_v53  ;;  %v321_v1 = vand.u32 4294901760, %v320_v61  ;;  %v312_v3 = vsub.f32 %v1395_v50, %v311_v58 }
  0x1c   : > { %1123 = vmatprep.mubr.f32.mxu1 %v253_v55  ;;  %v293_v2 = vand.u32 4294901760, %v292_v60 }
  0x1d   : > { %1124 = vmatmul.mubr.f32.vlgmr.msra.gmra.mrb[0].mxu1 %v263_v56  ;;  %1175 = vmatmul.mubr.f32.gmra.mrb[2].mxu0 %v281_v49  ;;  %v303_v7 = vand.u32 4294901760, %v302_v0  ;;  %v322_v5 = vsub.f32 %v320_v61, %v321_v1  ;;  %v313_v6 = vand.u32 4294901760, %v312_v3 }
  0x1e   : > { %1222 = vmatpush3.bf16.msra.mxu1 %v1219_v32  ;;  %1126 = vmatprep.mubr.f32.mxu1 %v273_v59 }
  0x1f   : > { %1177 = vmatprep.mubr.f32.mxu0 %v291_v52  ;;  %1224 = vmatprep.subr.bf16.mxu1 %v1223_v62  ;;  %v323_v8 = vand.u32 4294901760, %v322_v5 }
  0x21   : > { %1127 = vmatmul.mubr.f32.gmra.mrb[2].mxu1 %v283_v63  ;;  %1178 = vmatmul.mubr.f32.gmra.mrb[4].mxu0 %v301_v53 }
  0x22   : > { %1129 = vmatprep.mubr.f32.mxu1 %v293_v2  ;;  %1180 = vmatprep.mubr.f32.mxu0 %v311_v58 }
  0x25   : > { %1130 = vmatmul.mubr.f32.gmra.mrb[4].mxu1 %v303_v7  ;;  %1181 = vmatmul.mubr.f32.gmra.mrb[6].mxu0 %v321_v1 }
  0x26   : > { %1132 = vmatprep.mubr.f32.mxu1 %v313_v6  ;;  %1187 = vmatprep.mubr.f32.mxu0 %v1351_v21 }
  0x29   : > { %1133 = vmatmul.mubr.f32.gmra.mrb[6].mxu1 %v323_v8  ;;  %1188 = vmatmul.mubr.f32.vlgmr.msra.gmra.mrb[0].mxu0 %v1353_v22 }
  0x2a   : > { %1139 = vmatprep.mubr.f32.mxu1 %v1351_v21  ;;  %1190 = vmatprep.mubr.f32.mxu0 %v1355_v26 }
  0x2b   : > { %1238 = vmatpush3.bf16.msra.mxu0 %v1326_v4 }
  0x2d   : > { %1140 = vmatmul.mubr.f32.vlgmr.msra.gmra.mrb[0].mxu1 %v1353_v22  ;;  %1191 = vmatmul.mubr.f32.gmra.mrb[2].mxu0 %v1366_v33 }
  0x2e   : > { %1226 = vmatpush3.bf16.msra.mxu1 %v1223_v62  ;;  %1142 = vmatprep.mubr.f32.mxu1 %v1355_v26 }
  0x2f   : > { %1193 = vmatprep.mubr.f32.mxu0 %v1371_v36 }
  0x31   : > { %1143 = vmatmul.mubr.f32.gmra.mrb[2].mxu1 %v1366_v33  ;;  %1194 = vmatmul.mubr.f32.gmra.mrb[4].mxu0 %v1373_v37 }
  0x32   : > { %1145 = vmatprep.mubr.f32.mxu1 %v1371_v36  ;;  %1196 = vmatprep.mubr.f32.mxu0 %v1381_v42 }
  0x35   : > { %1146 = vmatmul.mubr.f32.gmra.mrb[4].mxu1 %v1373_v37  ;;  %1197 = vmatmul.mubr.f32.gmra.mrb[6].mxu0 %v1400_v54 }
  0x36   : > { %1148 = vmatprep.mubr.f32.mxu1 %v1381_v42  ;;  %1203 = vmatprep.mubr.f32.mxu0 %v1351_v21 }
  0x39   : > { %1149 = vmatmul.mubr.f32.gmra.mrb[6].mxu1 %v1400_v54  ;;  %1204 = vmatmul.mubr.f32.vlgmr.msra.gmra.mrb[0].mxu0 %v1353_v22 }
  0x3a   : > { %1155 = vmatprep.mubr.f32.mxu1 %v1361_v30  ;;  %1206 = vmatprep.mubr.f32.mxu0 %v1355_v26 }
  0x3d   : > { %1156 = vmatmul.mubr.f32.vlgmr.msra.gmra.mrb[0].mxu1 %v1364_v31  ;;  %1207 = vmatmul.mubr.f32.gmra.mrb[2].mxu0 %v1366_v33 }
  0x3e   : > { %1158 = vmatprep.mubr.f32.mxu1 %v1369_v35  ;;  %1209 = vmatprep.mubr.f32.mxu0 %v1371_v36 }
  0x41   : > { %1159 = vmatmul.mubr.f32.gmra.mrb[2].mxu1 %v1379_v41  ;;  %1210 = vmatmul.mubr.f32.gmra.mrb[4].mxu0 %v1373_v37 }
  0x42   : > { %1161 = vmatprep.mubr.f32.mxu1 %v1385_v44  ;;  %1212 = vmatprep.mubr.f32.mxu0 %v1381_v42 }
  0x45   : > { %1162 = vmatmul.mubr.f32.gmra.mrb[4].mxu1 %v1388_v45  ;;  %1213 = vmatmul.mubr.f32.gmra.mrb[6].mxu0 %v1400_v54 }
  0x46   : > { %1164 = vmatprep.mubr.f32.mxu1 %v1395_v50 }
  0x49   : > { %1165 = vmatmul.mubr.f32.gmra.mrb[6].mxu1 %v320_v61 }
 0x10c   : > { %v1205_v4 = vpop.f32.mrb[0].mxu0 }
 0x10d   : > { %v896_v9 = vpop.f32.mrb[1].mxu0 }
 0x110   : > { %v1157_v10 = vpop.f32.mrb[0].mxu1  ;;  %v1208_v11 = vpop.f32.mrb[2].mxu0 }
 0x111   : > { %v1239_v12 = vadd.f32 %v1205_v4, %v1157_v10  ;;  %v524_v13 = vpop.f32.mrb[1].mxu1  ;;  %v908_v14 = vpop.f32.mrb[3].mxu0 }
 0x112   : > { %v1240_v15 = vadd.f32 %v896_v9, %v524_v13 }
 0x113   : > { %944 = vst.msk [vmem:[%s1448_s22 + $0x8] sm:$0xff] %vm942_vm1, %v1239_v12  ;;  %961 = vrot.lane.b32.xlu0 %v1239_v12, %s1296_s23 }
 0x114   : > { %943 = vst.msk [vmem:[%s1448_s22] sm:$0xff] %vm942_vm1, %v1240_v15  ;;  %v1160_v16 = vpop.f32.mrb[2].mxu1  ;;  %v1211_v17 = vpop.f32.mrb[4].mxu0 }
 0x115   : > { %v1241_v18 = vadd.f32 %v1208_v11, %v1160_v16  ;;  %v538_v19 = vpop.f32.mrb[3].mxu1  ;;  %v920_v20 = vpop.f32.mrb[5].mxu0 }
 0x116   : > { %v1242_v21 = vadd.f32 %v908_v14, %v538_v19 }
 0x117   : > { %946 = vst.msk [vmem:[%s1448_s22 + $0x18] sm:$0xff] %vm942_vm1, %v1241_v18  ;;  %959 = vrot.lane.b32.xlu0 %v1240_v15, %s1296_s23  ;;  %965 = vrot.lane.b32.xlu1 %v1241_v18, %s1296_s23 }
 0x118   : > { %945 = vst.msk [vmem:[%s1448_s22 + $0x10] sm:$0xff] %vm942_vm1, %v1242_v21  ;;  %v1163_v22 = vpop.f32.mrb[4].mxu1  ;;  %v1214_v23 = vpop.f32.mrb[6].mxu0 }
 0x119   : > { %v1243_v24 = vadd.f32 %v1211_v17, %v1163_v22  ;;  %v552_v25 = vpop.f32.mrb[5].mxu1  ;;  %v932_v26 = vpop.f32.mrb[7].mxu0 }
 0x11a   : > { %v1244_v27 = vadd.f32 %v920_v20, %v552_v25 }
 0x11b   : > { %948 = vst.msk [vmem:[%s1448_s22 + $0x28] sm:$0xff] %vm942_vm1, %v1243_v24  ;;  %963 = vrot.lane.b32.xlu1 %v1242_v21, %s1296_s23 }
 0x11c   : > { %947 = vst.msk [vmem:[%s1448_s22 + $0x20] sm:$0xff] %vm942_vm1, %v1244_v27  ;;  %967 = vrot.lane.b32.xlu0 %v1244_v27, %s1296_s23  ;;  %v1166_v28 = vpop.f32.mrb[6].mxu1 }
 0x11d   : > { %v1245_v29 = vadd.f32 %v1214_v23, %v1166_v28  ;;  %v566_v30 = vpop.f32.mrb[7].mxu1 }
 0x11e   : > { %v1246_v31 = vadd.f32 %v932_v26, %v566_v30 }
 0x11f   : > { %950 = vst.msk [vmem:[%s1448_s22 + $0x38] sm:$0xff] %vm942_vm1, %v1245_v29  ;;  %969 = vrot.lane.b32.xlu1 %v1243_v24, %s1296_s23 }
 0x120   : > { %949 = vst.msk [vmem:[%s1448_s22 + $0x30] sm:$0xff] %vm942_vm1, %v1246_v31  ;;  %971 = vrot.lane.b32.xlu0 %v1246_v31, %s1296_s23 }
 0x123   : > { %973 = vrot.lane.b32.xlu1 %v1245_v29, %s1296_s23 }
 0x185   : > { %v962_v32 = vpop.permute.xlu0 %961 }
 0x186   : > { %985 = vst.msk [vmem:[%s1448_s22 + $0x8] sm:$0xff] %vm983_vm2, %v962_v32 }
 0x189   : > { %v960_v33 = vpop.permute.xlu0 %959  ;;  %v966_v34 = vpop.permute.xlu1 %965 }
 0x18a   : > { %984 = vst.msk [vmem:[%s1448_s22] sm:$0xff] %vm983_vm2, %v960_v33  ;;  %987 = vst.msk [vmem:[%s1448_s22 + $0x18] sm:$0xff] %vm983_vm2, %v966_v34 }
 0x18d   : > { %v964_v35 = vpop.permute.xlu1 %963 }
 0x18e   : > { %986 = vst.msk [vmem:[%s1448_s22 + $0x10] sm:$0xff] %vm983_vm2, %v964_v35  ;;  %v968_v36 = vpop.permute.xlu0 %967 }
 0x18f   : > { %988 = vst.msk [vmem:[%s1448_s22 + $0x20] sm:$0xff] %vm983_vm2, %v968_v36 }
 0x191   : > { %v970_v37 = vpop.permute.xlu1 %969 }
 0x192   : > { %989 = vst.msk [vmem:[%s1448_s22 + $0x28] sm:$0xff] %vm983_vm2, %v970_v37  ;;  %v972_v38 = vpop.permute.xlu0 %971 }
 0x193   : > { %990 = vst.msk [vmem:[%s1448_s22 + $0x30] sm:$0xff] %vm983_vm2, %v972_v38 }
 0x195   : > { %v974_v39 = vpop.permute.xlu1 %973 }
 0x196   : > { %991 = vst.msk [vmem:[%s1448_s22 + $0x38] sm:$0xff] %vm983_vm2, %v974_v39 }
 0x197 PF: > { %s12_s9 = sadd.s32 1, %s1294_s9  }
 0x198   : > { %p9_p4 = scmp.ge.s32.totalorder %s12_s9, 4  }
 0x19a   :  { %11 = sbr.rel (!%p9_p4) target bundleno = 1 (0x1), region = 58 }

</bundles_post_ra>
